<compile_context>
chip_gen: v6e
topology: v6e:2x2x1
jax: 0.10.0
libtpu: 0.0.40
codegen_flags: <defaults>
</compile_context>

<pallas_src>
import math

import jax
import jax.numpy as jnp
from jax.experimental import pallas as pl
from jax.experimental.pallas import tpu as pltpu


def _cdiv(a, b):
    return -(-a // b)


def _round_up(a, b):
    return _cdiv(a, b) * b


def _num_tensorcores():
    """Best-effort TensorCore count of the local device (v7x has 2)."""
    try:
        d = jax.devices()[0]
        for attr in ("num_cores", "core_count", "num_tensorcores"):
            v = getattr(d, attr, None)
            if isinstance(v, int) and v >= 1:
                return v
    except Exception:
        pass
    return 1


def _attentive_kernel(x_ref, w_ref, o_ref):
    # x @ diag(w) == x * w broadcast over rows; pure VPU elementwise multiply.
    o_ref[...] = (x_ref[...] * w_ref[...]).astype(o_ref.dtype)


def attentive_forward(x, w, *, target_block_bytes=4 << 20,
                      min_pallas_bytes=1 << 20):
    """x: (..., isize) array, w: (isize,) array.  Returns x @ diag(w)."""
    isize = x.shape[-1]
    assert w.shape == (isize,)
    orig_shape = x.shape
    dtype = x.dtype
    itemsize = jnp.dtype(dtype).itemsize

    total = 1
    for d in orig_shape:
        total *= d
    if total == 0:
        return x

    # ---- tiny-tensor fast path: launch overhead would dominate, let XLA fuse.
    if total * itemsize < min_pallas_bytes:
        return x * w.astype(dtype)

    n_rows_logical = total // isize

    # ---- lane-dense repack: fold g logical rows so lane is a multiple of 128
    #      (full-width vector stores).  Only when the reshape is a pure bitcast.
    group = 1
    if isize % 128 != 0:
        g = math.lcm(isize, 128) // isize
        if isize * g <= 2048 and n_rows_logical % g == 0:
            group = g
        # TODO(synk): else fall back to lane=isize (masked stores on the last
        # dim); padding the last dim would cost an extra full HBM pass.
    lane = isize * group
    w_dense = (jnp.tile(w, group) if group > 1 else w).reshape(1, lane).astype(dtype)

    rows = n_rows_logical // group            # rows * lane == total exactly
    x2 = x.reshape(rows, lane)                # contiguous reshape -> bitcast

    # ---- sublane multiple dictated by dtype packing (f32:8, bf16:16, int8:32).
    sub = max(8, 32 // itemsize)

    # ---- row tile: ~target_block_bytes per block (amortizes the ~0.35us/step
    #      pipeline overhead), only split for multiple TensorCores.
    tm_cap = max(sub, (target_block_bytes // (lane * itemsize)) // sub * sub)
    if rows <= sub:
        tm_eff = rows                          # block == full dim (allowed)
    else:
        tm_eff = min(tm_cap, _round_up(rows, sub))
        num_tc = _num_tensorcores()
        if num_tc >= 2:
            # ensure >= num_tc grid steps so the "parallel" axis can shard.
            tm_eff = min(tm_eff, _round_up(_cdiv(rows, num_tc), sub))

    grid = pl.cdiv(rows, tm_eff)              # partial last block is masked

    out = pl.pallas_call(
        _attentive_kernel,
        out_shape=jax.ShapeDtypeStruct((rows, lane), dtype),
        grid_spec=pltpu.PrefetchScalarGridSpec(
            num_scalar_prefetch=0,
            grid=(grid,),
            in_specs=[
                pl.BlockSpec((tm_eff, lane), lambda i: (i, 0)),   # streaming rows
                pl.BlockSpec((1, lane), lambda i: (0, 0)),        # resident diag
            ],
            out_specs=pl.BlockSpec((tm_eff, lane), lambda i: (i, 0)),
        ),
        compiler_params=pltpu.CompilerParams(
            dimension_semantics=("parallel",),
            vmem_limit_bytes=32 << 20,
        ),
        cost_estimate=pl.CostEstimate(
            flops=total,
            transcendentals=0,
            bytes_accessed=2 * total * itemsize + lane * itemsize,
        ),
    )(x2, w_dense)

    return out.reshape(orig_shape)


if __name__ == "__main__":
    key = jax.random.PRNGKey(0)

    # Small shapes consistent with the module: batch=2, seq=8, isize(hidden)=32.
    B, S, H = 2, 8, 32
    x = jax.random.normal(key, (B, S, H), dtype=jnp.float32)

    # Deterministic parameter init exactly as in __init__: w = ones(isize).
    w = jnp.ones((H,), dtype=jnp.float32)
    y = jax.block_until_ready(attentive_forward(x, w, min_pallas_bytes=0))
    ref = x @ jnp.diag(w)
    assert y.shape == x.shape
    assert jnp.allclose(y, ref, atol=1e-6), "mismatch vs reference (w=ones)"

    # Non-constant w to validate the lane-dense fold / broadcast mapping.
    w_rand = jax.random.normal(jax.random.PRNGKey(1), (H,), dtype=jnp.float32)
    y2 = jax.block_until_ready(attentive_forward(x, w_rand, min_pallas_bytes=0))
    ref2 = x @ jnp.diag(w_rand)
    assert jnp.allclose(y2, ref2, atol=1e-5), "mismatch vs reference (random w)"

    # Ragged shape: row count not divisible by the fold group -> falls back to
    # lane=isize with a masked partial final row block (no padding copies).
    x3 = jax.random.normal(jax.random.PRNGKey(2), (3, 37, H), dtype=jnp.float32)
    y3 = jax.block_until_ready(attentive_forward(x3, w_rand, min_pallas_bytes=0))
    ref3 = x3 @ jnp.diag(w_rand)
    assert jnp.allclose(y3, ref3, atol=1e-5), "mismatch vs reference (ragged)"

    # Larger, already lane-dense input exercising the default (multi-step) path.
    H4 = 128
    x4 = jax.random.normal(jax.random.PRNGKey(3), (8, 512, H4), dtype=jnp.float32)
    w4 = jax.random.normal(jax.random.PRNGKey(4), (H4,), dtype=jnp.float32)
    y4 = jax.block_until_ready(attentive_forward(x4, w4, min_pallas_bytes=0))
    ref4 = x4 * w4
    assert jnp.allclose(y4, ref4, atol=1e-5), "mismatch vs reference (large)"

    print("KERNEL_OK")
</pallas_src>

<mosaic_0001>
module attributes {stable_mosaic.version = 11 : i64} {
  func.func @_attentive_kernel(%arg0: i32, %arg1: memref<4x128xf32, #tpu.memory_space<vmem>>, %arg2: memref<1x128xf32, #tpu.memory_space<vmem>>, %arg3: memref<4x128xf32, #tpu.memory_space<vmem>>) attributes {dimension_semantics = [#tpu.dimension_semantics<parallel>], iteration_bounds = array<i64: 1>, scalar_prefetch = 0 : i64, scratch_operands = 0 : i64, tpu.core_type = #tpu.core_type<tc>, window_params = [{transform_indices = @transform_0, window_bounds = array<i64: 4, 128>}, {pipeline_mode = #tpu.pipeline_mode<synchronous>, transform_indices = @transform_1, window_bounds = array<i64: 1, 128>}, {transform_indices = @transform_2, window_bounds = array<i64: 4, 128>}]} {
    %c0 = arith.constant 0 : index
    %c0_0 = arith.constant 0 : index
    %0 = vector.load %arg1[%c0, %c0_0] : memref<4x128xf32, #tpu.memory_space<vmem>>, vector<4x128xf32>
    %c0_1 = arith.constant 0 : index
    %c0_2 = arith.constant 0 : index
    %1 = vector.load %arg2[%c0_1, %c0_2] : memref<1x128xf32, #tpu.memory_space<vmem>>, vector<1x128xf32>
    %2 = vector.broadcast %1 : vector<1x128xf32> to vector<4x128xf32>
    %3 = arith.mulf %0, %2 : vector<4x128xf32>
    %c0_3 = arith.constant 0 : index
    %c0_4 = arith.constant 0 : index
    %4 = vector.load %arg3[%c0_3, %c0_4] : memref<4x128xf32, #tpu.memory_space<vmem>>, vector<4x128xf32>
    tpu.vector_store %arg3[%c0_3, %c0_4], %3 {strides = array<i32>} : memref<4x128xf32, #tpu.memory_space<vmem>>, vector<4x128xf32>,
    return
  }
  func.func @transform_0(%arg0: i32) -> (i32, i32) {
    %c0_i32 = arith.constant 0 : i32
    %c0_i32_0 = arith.constant 0 : i32
    return %arg0, %c0_i32 : i32, i32
  }
  func.func @transform_1(%arg0: i32) -> (i32, i32) {
    %c0_i32 = arith.constant 0 : i32
    %c0_i32_0 = arith.constant 0 : i32
    %c0_i32_1 = arith.constant 0 : i32
    return %c0_i32, %c0_i32_0 : i32, i32
  }
  func.func @transform_2(%arg0: i32) -> (i32, i32) {
    %c0_i32 = arith.constant 0 : i32
    %c0_i32_0 = arith.constant 0 : i32
    return %arg0, %c0_i32 : i32, i32
  }
}

</mosaic_0001>

<bundles_post_ra>
// kernel: tpu_custom_call.1
= control target key start
LH: loop header
LB: loop body
LE: loop exit
PB: predicated region body
PF: predicated region fallthrough
CT: control target
= control target key end

     0   :  { %7 = vsyncpa [#allocation3], 0  ;;  %s122_s0 = inlined_call_operand.hbm [shape: f32[4,128], index: 0, kind: input, shape index: {}]   ;;  %s123_s1 = inlined_call_operand.vmem [shape: f32[1,128], index: 1, kind: input, shape index: {}]   ;;  %s124_s2 = inlined_call_operand.hbm [shape: f32[4,128], index: 2, kind: output, shape index: {}]  }
   0x1   :  { %8 = vsyncpa [#allocation4], 0  ;;  %s96_s9 = smov [#allocation2]  }
   0x2   :  { %s15_s10 = sshll.u32 %s96_s9, 4  ;;  %s16_s10 = int_to_ptr.vmem [resolvable:$true] %s15_s10 }
   0x3   :  { %s60_s11 = scalar_lea.vmem %s16_s10, 64  ;;  %p65_p1 = scmp.lt.s32.totalorder %s16_s10, %s16_s10 }
   0x4   :  { %p61_p0 = scmp.ne.s32.totalorder %s16_s10, %s60_s11  ;;  %p66_p2 = scmp.lt.s32.totalorder %s60_s11, %s60_s11 }
   0x6   :  { %p67_p3 = por %p66_p2, %p65_p1 }
   0x8   :  { %p68_p4 = pnand %p67_p3, %p61_p0 }
   0xa   :  { %71 = shalt.err (!%p68_p4)
}
   0xb   :  { %18 = dma.hbm_to_vmem [thread:$0]  %s122_s0, 64, %s16_s10, [#allocation3]  }
   0xc   :  { %92 = dma.done.wait [#allocation3], 64  }
   0xd   :  { %93 = vsyncadd [#allocation3], 4294967232  ;;  %s97_s14 = smov [#allocation5]   ;;  %v24_v0 = vld [vmem:[#allocation2] sm:$0xf] }
   0xe   :  { %s40_s15 = sshll.u32 %s97_s14, 4  ;;  %v49_v1 = vld [vmem:[%s123_s1] ss:$0 sm:$0xff]  ;;  %s41_s15 = int_to_ptr.vmem [resolvable:$true] %s40_s15 }
   0xf   :  { %v32_v2 = vmul.f32 %v49_v1, %v24_v0  ;;  %s72_s18 = scalar_lea.vmem %s41_s15, 64  ;;  %p77_p6 = scmp.lt.s32.totalorder %s41_s15, %s41_s15 }
  0x10   :  { %p73_p5 = scmp.ne.s32.totalorder %s41_s15, %s72_s18  ;;  %p78_p7 = scmp.lt.s32.totalorder %s72_s18, %s72_s18 }
  0x11   :  { %33 = vst [vmem:[#allocation5] sm:$0xf] %v32_v2 }
  0x12   :  { %p79_p8 = por %p78_p7, %p77_p6 }
  0x14   :  { %p80_p9 = pnand %p79_p8, %p73_p5 }
  0x16   :  { %83 = shalt.err (!%p80_p9)
}
  0x17   :  { %43 = dma.vmem_to_hbm [thread:$0]  %s41_s15, 64, %s124_s2, [#allocation4]  }
  0x18   :  { %94 = dma.done.wait [#allocation4], 64  }
  0x19   :  { %95 = vsyncadd [#allocation4], 4294967232 }
  0x1a   :  { %47 = vsyncpa [#allocation3], 1 }
  0x1b   :  { %48 = vsyncpa [#allocation4], 1 }

</bundles_post_ra>
